<compile_context>
chip_gen: v5e
topology: v5e:2x2
jax: 0.10.0
libtpu: 0.0.40
codegen_flags: <defaults>
</compile_context>

<pallas_src>
import functools
import math

import jax
import jax.numpy as jnp
from jax.experimental import pallas as pl
from jax.experimental.pallas import tpu as pltpu


def _ceil_div(a, b):
    return -(-a // b)


def _min_group(fin, fout):
    """Smallest G such that G*Fin and G*Fout are both multiples of 128 (lane-dense blocks)."""
    def m(f):
        return 128 // math.gcd(int(f), 128)
    a, b = m(fin), m(fout)
    return a * b // math.gcd(a, b)          # lcm(a, b)


# ---------------------------------------------------------------------------
# Packed kernel: one block-diagonal matmul per grid step (G channels at once).
# ---------------------------------------------------------------------------
def _dense_packed_kernel(ch_ref, x_ref, w_ref, b_ref, o_ref, wblk_ref, bblk_ref, *,
                         group, fin, fout, residual_mode, matmul_dtype):
    base = pl.program_id(0) * group
    # Rebuild the block-diagonal weight (G*Fin, G*Fout) and packed bias row (1, G*Fout).
    # Rebuilt every step (cheap: a few KB of VMEM stores) so it is megacore-safe.
    wblk_ref[...] = jnp.zeros_like(wblk_ref)
    for j in range(group):                                   # static unrolled, G is small
        c = ch_ref[base + j]                                 # channel id from SMEM
        wblk_ref[j * fin:(j + 1) * fin, j * fout:(j + 1) * fout] = \
            w_ref[c].astype(wblk_ref.dtype)                  # gathered from VMEM bank
        bblk_ref[:, j * fout:(j + 1) * fout] = b_ref[c].astype(bblk_ref.dtype)

    x = x_ref[...]                                           # (B_t, G*Fin)
    xm = x.astype(matmul_dtype) if matmul_dtype is not None else x
    y = jnp.dot(xm, wblk_ref[...], preferred_element_type=jnp.float32)   # one dense MXU matmul
    y = jnp.tanh(y + bblk_ref[...])                          # single EUP stream over the slab

    if residual_mode == 0:
        o_ref[...] = y.astype(o_ref.dtype)
    elif residual_mode == 1:                                 # Fout == Fin: whole-slab residual add
        o_ref[...] = (y + x.astype(y.dtype)).astype(o_ref.dtype)
    else:                                                    # Fout == 2*Fin: sliced adds, no concat
        xr = x.astype(y.dtype)
        for j in range(group):
            xs = xr[:, j * fin:(j + 1) * fin]
            lo = j * fout
            o_ref[:, lo:lo + fin] = (y[:, lo:lo + fin] + xs).astype(o_ref.dtype)
            o_ref[:, lo + fin:lo + fout] = (y[:, lo + fin:lo + fout] + xs).astype(o_ref.dtype)


# ---------------------------------------------------------------------------
# Loop kernel: G small per-channel matmuls per grid step (used when packing loses).
# ---------------------------------------------------------------------------
def _dense_loop_kernel(ch_ref, x_ref, w_ref, b_ref, o_ref, *,
                       group, fin, fout, residual_mode, matmul_dtype):
    base = pl.program_id(0) * group
    for j in range(group):
        c = ch_ref[base + j]
        x = x_ref[:, j * fin:(j + 1) * fin]                  # (B_t, Fin)
        w = w_ref[c]                                         # (Fin, Fout)
        if matmul_dtype is not None:
            xm, wm = x.astype(matmul_dtype), w.astype(matmul_dtype)
        else:
            xm, wm = x, w
        y = jnp.dot(xm, wm, preferred_element_type=jnp.float32)
        y = jnp.tanh(y + b_ref[c])
        off = j * fout
        if residual_mode == 0:
            o_ref[:, off:off + fout] = y.astype(o_ref.dtype)
        elif residual_mode == 1:
            o_ref[:, off:off + fout] = (y + x.astype(y.dtype)).astype(o_ref.dtype)
        else:
            xr = x.astype(y.dtype)
            o_ref[:, off:off + fin] = (y[:, :fin] + xr).astype(o_ref.dtype)
            o_ref[:, off + fin:off + fout] = (y[:, fin:] + xr).astype(o_ref.dtype)


# ---------------------------------------------------------------------------
# Fallback kernel (large banks): one channel per grid step, weight gathered by the index_map.
# ---------------------------------------------------------------------------
def _dense_gathered_kernel(ch_ref, x_ref, w_ref, b_ref, o_ref, *,
                           fin, fout, residual_mode, matmul_dtype):
    x = x_ref[0]                                             # (B, Fin)
    w = w_ref[0]                                             # (Fin, Fout), pre-transposed & gathered
    if matmul_dtype is not None:
        xm, wm = x.astype(matmul_dtype), w.astype(matmul_dtype)
    else:
        xm, wm = x, w
    y = jnp.tanh(jnp.dot(xm, wm, preferred_element_type=jnp.float32) + b_ref[0])
    if residual_mode == 0:
        o_ref[0] = y.astype(o_ref.dtype)
    elif residual_mode == 1:
        o_ref[0] = (y + x.astype(y.dtype)).astype(o_ref.dtype)
    else:
        xr = x.astype(y.dtype)
        o_ref[0, :, :fin] = (y[:, :fin] + xr).astype(o_ref.dtype)
        o_ref[0, :, fin:] = (y[:, fin:] + xr).astype(o_ref.dtype)


# ---------------------------------------------------------------------------
# Wrappers
# ---------------------------------------------------------------------------
def _dense_grouped(x, channels, weight_t, bias3, mode, matmul_dtype, force_path=None):
    B, Csel, Fin = x.shape
    NC, _, Fout = weight_t.shape
    esize = jnp.dtype(x.dtype).itemsize

    # --- choose packed (block-diagonal) vs per-channel loop path by MXU-pass count ---
    g_min = _min_group(Fin, Fout)
    mm_dt = matmul_dtype if matmul_dtype is not None else x.dtype
    packed_cost = _ceil_div(g_min * Fin, 128) * _ceil_div(g_min * Fout, 128)
    loop_cost = min(g_min, Csel) * _ceil_div(Fin, 128) * _ceil_div(Fout, 128)
    wblk_bytes = (g_min * Fin) * (g_min * Fout) * jnp.dtype(mm_dt).itemsize
    use_packed = (packed_cost < loop_cost) and (wblk_bytes <= 2 * 1024 * 1024)
    if force_path == "packed":
        use_packed = True
    elif force_path == "loop":
        use_packed = False

    if use_packed:
        G = g_min                                            # minimal G -> dense MXU tiles, no waste
    else:
        if g_min >= Csel:
            G = Csel                                         # single group: blocks == full dims
        else:
            G = g_min
            while G * 2 <= Csel and G * Fout < 512:          # amortize per-step overhead
                G *= 2
    n_groups = _ceil_div(Csel, G)
    Cpad = G * n_groups

    # --- batch tiling (second parallel grid axis) ---
    if B <= 512:
        tb, Bpad = B, B
    else:
        tb = 256
        Bpad = _ceil_div(B, tb) * tb
    n_b = Bpad // tb

    xp = x
    if Cpad != Csel or Bpad != B:
        xp = jnp.pad(x, ((0, Bpad - B), (0, Cpad - Csel), (0, 0)))
    ch = channels if Cpad == Csel else jnp.pad(channels, (0, Cpad - Csel))  # pad with valid id 0
    x_flat = xp.reshape(Bpad, Cpad * Fin)                    # contiguous reshape, no transpose

    if use_packed:
        kernel = functools.partial(
            _dense_packed_kernel, group=G, fin=Fin, fout=Fout,
            residual_mode=mode, matmul_dtype=matmul_dtype)
        scratch_shapes = [pltpu.VMEM((G * Fin, G * Fout), mm_dt),
                          pltpu.VMEM((1, G * Fout), jnp.float32)]
    else:
        kernel = functools.partial(
            _dense_loop_kernel, group=G, fin=Fin, fout=Fout,
            residual_mode=mode, matmul_dtype=matmul_dtype)
        scratch_shapes = []

    bank_bytes = (weight_t.size + bias3.size) * esize
    block_bytes = 2 * tb * G * (Fin + Fout) * esize + bank_bytes
    if use_packed:
        block_bytes += wblk_bytes + G * Fout * 4
    cp = dict(dimension_semantics=("parallel", "parallel"))
    if block_bytes > 24 * 1024 * 1024:
        cp["vmem_limit_bytes"] = min(int(block_bytes * 1.25), 60 * 1024 * 1024)

    out_flat = pl.pallas_call(
        kernel,
        out_shape=jax.ShapeDtypeStruct((Bpad, Cpad * Fout), x.dtype),
        grid_spec=pltpu.PrefetchScalarGridSpec(
            num_scalar_prefetch=1,                           # `channels` -> SMEM
            grid=(n_groups, n_b),
            in_specs=[
                pl.BlockSpec((tb, G * Fin), lambda g, b, c: (b, g)),        # G channels of x
                pl.BlockSpec((NC, Fin, Fout), lambda g, b, c: (0, 0, 0)),   # VMEM-resident bank
                pl.BlockSpec((NC, 1, Fout), lambda g, b, c: (0, 0, 0)),     # VMEM-resident bias
            ],
            out_specs=pl.BlockSpec((tb, G * Fout), lambda g, b, c: (b, g)),  # lane-dense output slab
            scratch_shapes=scratch_shapes),
        compiler_params=pltpu.CompilerParams(**cp),
    )(ch, x_flat, weight_t, bias3)

    out = out_flat.reshape(Bpad, Cpad, Fout)
    if Cpad != Csel or Bpad != B:
        out = out[:B, :Csel, :]
    return out


def _dense_gathered(x, channels, weight_t, bias3, mode, matmul_dtype):
    # Fallback when the weight bank is too large to keep resident in VMEM.
    B, Csel, Fin = x.shape
    NC, _, Fout = weight_t.shape
    x_cm = jnp.transpose(x, (1, 0, 2))                       # (Csel, B, Fin)

    esize = jnp.dtype(x.dtype).itemsize
    block_bytes = 2 * (Fin * Fout + B * Fin + B * Fout + Fout) * esize
    cp = dict(dimension_semantics=("parallel",))
    if block_bytes > 24 * 1024 * 1024:
        # TODO(synk): for very large Fin/Fout, tile the Fin axis with a VMEM f32 accumulator
        # (init/finalize via pl.when) instead of only raising the limit.
        cp["vmem_limit_bytes"] = min(int(block_bytes * 1.25), 60 * 1024 * 1024)

    kernel = functools.partial(
        _dense_gathered_kernel, fin=Fin, fout=Fout,
        residual_mode=mode, matmul_dtype=matmul_dtype)

    out_cm = pl.pallas_call(
        kernel,
        out_shape=jax.ShapeDtypeStruct((Csel, B, Fout), x.dtype),
        grid_spec=pltpu.PrefetchScalarGridSpec(
            num_scalar_prefetch=1,
            grid=(Csel,),
            in_specs=[
                pl.BlockSpec((1, B, Fin), lambda i, c: (i, 0, 0)),
                pl.BlockSpec((1, Fin, Fout), lambda i, c: (c[i], 0, 0)),    # weight_t[channels[i]]
                pl.BlockSpec((1, 1, Fout), lambda i, c: (c[i], 0, 0)),      # bias[channels[i]]
            ],
            out_specs=pl.BlockSpec((1, B, Fout), lambda i, c: (i, 0, 0)),
        ),
        compiler_params=pltpu.CompilerParams(**cp),
    )(channels, x_cm, weight_t, bias3)

    return jnp.transpose(out_cm, (1, 0, 2))


def dense_forward(x, channels, weight, bias=None, *, residual=False, matmul_dtype=None,
                  _force_path=None):
    """abfml Dense forward.

    x: (B, Csel, Fin); channels: (Csel,) int; weight: (NC, Fout, Fin); bias: (NC, Fout) or None.
    Returns (out, channels) with out: (B, Csel, Fout), matching the PyTorch module.
    Activation is tanh (the module's default). matmul_dtype=jnp.bfloat16 enables bf16 MXU inputs.
    """
    B, Csel, Fin = x.shape
    NC, Fout, _ = weight.shape

    if not residual:
        mode = 0
    elif Fout == Fin:
        mode = 1
    elif Fout == 2 * Fin:
        mode = 2
    else:
        raise NotImplementedError("Not implemented")

    channels = jnp.asarray(channels, jnp.int32)
    if bias is None:
        bias = jnp.zeros((NC, Fout), x.dtype)

    weight_t = jnp.transpose(weight, (0, 2, 1))              # (NC, Fin, Fout): once, outside kernel
    bias3 = bias.reshape(NC, 1, Fout)

    esize = jnp.dtype(x.dtype).itemsize
    bank_bytes = (weight_t.size + bias3.size) * esize
    if _force_path == "gathered" or bank_bytes > 4 * 1024 * 1024:
        out = _dense_gathered(x, channels, weight_t, bias3, mode, matmul_dtype)
    else:
        out = _dense_grouped(x, channels, weight_t, bias3, mode, matmul_dtype,
                             force_path=_force_path)
    return out, channels


# ---------------------------------------------------------------------------
# Reference / init / demo
# ---------------------------------------------------------------------------
def _init_params(key, num_channels, in_features, out_features, dtype=jnp.float32):
    # kaiming_uniform_(a=sqrt(5)) + matching bias init both reduce to U(-1/sqrt(fan_in), 1/sqrt(fan_in)).
    kw, kb = jax.random.split(key)
    bound = 1.0 / (in_features ** 0.5)
    weight = jax.random.uniform(
        kw, (num_channels, out_features, in_features), dtype, minval=-bound, maxval=bound)
    bias = jax.random.uniform(
        kb, (num_channels, out_features), dtype, minval=-bound, maxval=bound)
    return weight, bias


def _reference(x, channels, weight, bias, residual):
    w = weight[channels]                                     # (Csel, Fout, Fin)
    out = jnp.einsum('bcf,cof->bco', x, w)
    if bias is not None:
        out = out + bias[channels][None, :, :]
    out = jnp.tanh(out)
    if residual:
        if out.shape[2] == x.shape[2]:
            out = out + x
        elif out.shape[2] == 2 * x.shape[2]:
            out = out + jnp.concatenate([x, x], axis=2)
    return out


if __name__ == "__main__":
    key = jax.random.PRNGKey(0)
    k_x, k_p1, k_p2, k_xb = jax.random.split(key, 4)

    batch, num_channels, in_features = 8, 4, 32
    channels = jnp.array([0, 2, 1, 3, 2], dtype=jnp.int32)   # Csel=5, includes a repeated id
    x = jax.random.normal(k_x, (batch, channels.shape[0], in_features), jnp.float32)

    # Case 1: square residual (Fout == Fin) -> packed block-diagonal path, whole-slab residual.
    w1, b1 = _init_params(k_p1, num_channels, in_features, in_features)
    out1, _ = dense_forward(x, channels, w1, b1, residual=True)
    out1 = jax.block_until_ready(out1)
    ref1 = _reference(x, channels, w1, b1, True)
    assert out1.shape == (batch, channels.shape[0], in_features)
    assert jnp.allclose(out1, ref1, atol=1e-4, rtol=1e-4), "case 1 mismatch vs reference"

    # Case 2: widening residual (Fout == 2*Fin) -> packed path, sliced residual adds.
    w2, b2 = _init_params(k_p2, num_channels, in_features, 2 * in_features)
    out2, _ = dense_forward(x, channels, w2, b2, residual=True)
    out2 = jax.block_until_ready(out2)
    ref2 = _reference(x, channels, w2, b2, True)
    assert out2.shape == (batch, channels.shape[0], 2 * in_features)
    assert jnp.allclose(out2, ref2, atol=1e-4, rtol=1e-4), "case 2 mismatch vs reference"

    # Case 3: per-channel loop path (forced), no residual.
    out3, _ = dense_forward(x, channels, w1, b1, residual=False, _force_path="loop")
    out3 = jax.block_until_ready(out3)
    ref3 = _reference(x, channels, w1, b1, False)
    assert jnp.allclose(out3, ref3, atol=1e-4, rtol=1e-4), "case 3 mismatch vs reference"

    # Case 4: gathered fallback path (forced) -> index_map weight gather from HBM.
    out4, _ = dense_forward(x, channels, w1, b1, residual=True, _force_path="gathered")
    out4 = jax.block_until_ready(out4)
    assert jnp.allclose(out4, ref1, atol=1e-4, rtol=1e-4), "case 4 mismatch vs reference"

    # Case 5: large batch -> batch-tiled grid (tb=256 with padding), packed path.
    xb = jax.random.normal(k_xb, (600, channels.shape[0], in_features), jnp.float32)
    out5, _ = dense_forward(xb, channels, w1, b1, residual=True)
    out5 = jax.block_until_ready(out5)
    ref5 = _reference(xb, channels, w1, b1, True)
    assert out5.shape == (600, channels.shape[0], in_features)
    assert jnp.allclose(out5, ref5, atol=1e-4, rtol=1e-4), "case 5 mismatch vs reference"

    print("KERNEL_OK")
</pallas_src>

<mosaic_0001>
module attributes {stable_mosaic.version = 11 : i64} {
  func.func @_dense_packed_kernel(%arg0: i32, %arg1: i32, %arg2: memref<8xi32, #tpu.memory_space<smem>>, %arg3: memref<8x128xf32, #tpu.memory_space<vmem>>, %arg4: memref<4x32x32xf32, #tpu.memory_space<vmem>>, %arg5: memref<4x1x32xf32, #tpu.memory_space<vmem>>, %arg6: memref<8x128xf32, #tpu.memory_space<vmem>>, %arg7: memref<128x128xf32, #tpu.memory_space<vmem>>, %arg8: memref<1x128xf32, #tpu.memory_space<vmem>>) attributes {dimension_semantics = [#tpu.dimension_semantics<parallel>, #tpu.dimension_semantics<parallel>], iteration_bounds = array<i64: 2, 1>, scalar_prefetch = 1 : i64, scratch_operands = 2 : i64, tpu.core_type = #tpu.core_type<tc>, window_params = [{transform_indices = @transform_0, window_bounds = array<i64: 8, 128>}, {pipeline_mode = #tpu.pipeline_mode<synchronous>, transform_indices = @transform_1, window_bounds = array<i64: 4, 32, 32>}, {pipeline_mode = #tpu.pipeline_mode<synchronous>, transform_indices = @transform_2, window_bounds = array<i64: 4, 1, 32>}, {transform_indices = @transform_3, window_bounds = array<i64: 8, 128>}]} {
    %c4_i32 = arith.constant 4 : i32
    %0 = arith.muli %arg0, %c4_i32 : i32
    %cst = arith.constant 0.000000e+00 : f32
    %1 = vector.broadcast %cst : f32 to vector<128x128xf32>
    %c0 = arith.constant 0 : index
    %c0_0 = arith.constant 0 : index
    %2 = vector.load %arg7[%c0, %c0_0] : memref<128x128xf32, #tpu.memory_space<vmem>>, vector<128x128xf32>
    tpu.vector_store %arg7[%c0, %c0_0], %1 {strides = array<i32>} : memref<128x128xf32, #tpu.memory_space<vmem>>, vector<128x128xf32>,
    %c0_i32 = arith.constant 0 : i32
    %3 = arith.addi %0, %c0_i32 : i32
    %4 = arith.index_cast %3 : i32 to index
    %5 = memref.load %arg2[%4] : memref<8xi32, #tpu.memory_space<smem>>
    %6 = arith.index_cast %5 : i32 to index
    %c0_1 = arith.constant 0 : index
    %c0_2 = arith.constant 0 : index
    %7 = vector.load %arg4[%6, %c0_1, %c0_2] : memref<4x32x32xf32, #tpu.memory_space<vmem>>, vector<1x32x32xf32>
    %8 = vector.shape_cast %7 : vector<1x32x32xf32> to vector<32x32xf32>
    %c0_3 = arith.constant 0 : index
    %c0_4 = arith.constant 0 : index
    %9 = vector.load %arg7[%c0_3, %c0_4] : memref<128x128xf32, #tpu.memory_space<vmem>>, vector<32x32xf32>
    tpu.vector_store %arg7[%c0_3, %c0_4], %8 {strides = array<i32>} : memref<128x128xf32, #tpu.memory_space<vmem>>, vector<32x32xf32>,
    %10 = arith.index_cast %5 : i32 to index
    %c0_5 = arith.constant 0 : index
    %c0_6 = arith.constant 0 : index
    %11 = vector.load %arg5[%10, %c0_5, %c0_6] : memref<4x1x32xf32, #tpu.memory_space<vmem>>, vector<1x1x32xf32>
    %12 = vector.shape_cast %11 : vector<1x1x32xf32> to vector<1x32xf32>
    %c0_7 = arith.constant 0 : index
    %c0_8 = arith.constant 0 : index
    %13 = vector.load %arg8[%c0_7, %c0_8] : memref<1x128xf32, #tpu.memory_space<vmem>>, vector<1x32xf32>
    tpu.vector_store %arg8[%c0_7, %c0_8], %12 {strides = array<i32>} : memref<1x128xf32, #tpu.memory_space<vmem>>, vector<1x32xf32>,
    %c1_i32 = arith.constant 1 : i32
    %14 = arith.addi %0, %c1_i32 : i32
    %15 = arith.index_cast %14 : i32 to index
    %16 = memref.load %arg2[%15] : memref<8xi32, #tpu.memory_space<smem>>
    %17 = arith.index_cast %16 : i32 to index
    %c0_9 = arith.constant 0 : index
    %c0_10 = arith.constant 0 : index
    %18 = vector.load %arg4[%17, %c0_9, %c0_10] : memref<4x32x32xf32, #tpu.memory_space<vmem>>, vector<1x32x32xf32>
    %19 = vector.shape_cast %18 : vector<1x32x32xf32> to vector<32x32xf32>
    %c32 = arith.constant 32 : index
    %c32_11 = arith.constant 32 : index
    %20 = vector.load %arg7[%c32, %c32_11] : memref<128x128xf32, #tpu.memory_space<vmem>>, vector<32x32xf32>
    tpu.vector_store %arg7[%c32, %c32_11], %19 {strides = array<i32>} : memref<128x128xf32, #tpu.memory_space<vmem>>, vector<32x32xf32>,
    %21 = arith.index_cast %16 : i32 to index
    %c0_12 = arith.constant 0 : index
    %c0_13 = arith.constant 0 : index
    %22 = vector.load %arg5[%21, %c0_12, %c0_13] : memref<4x1x32xf32, #tpu.memory_space<vmem>>, vector<1x1x32xf32>
    %23 = vector.shape_cast %22 : vector<1x1x32xf32> to vector<1x32xf32>
    %c0_14 = arith.constant 0 : index
    %c32_15 = arith.constant 32 : index
    %24 = vector.load %arg8[%c0_14, %c32_15] : memref<1x128xf32, #tpu.memory_space<vmem>>, vector<1x32xf32>
    tpu.vector_store %arg8[%c0_14, %c32_15], %23 {strides = array<i32>} : memref<1x128xf32, #tpu.memory_space<vmem>>, vector<1x32xf32>,
    %c2_i32 = arith.constant 2 : i32
    %25 = arith.addi %0, %c2_i32 : i32
    %26 = arith.index_cast %25 : i32 to index
    %27 = memref.load %arg2[%26] : memref<8xi32, #tpu.memory_space<smem>>
    %28 = arith.index_cast %27 : i32 to index
    %c0_16 = arith.constant 0 : index
    %c0_17 = arith.constant 0 : index
    %29 = vector.load %arg4[%28, %c0_16, %c0_17] : memref<4x32x32xf32, #tpu.memory_space<vmem>>, vector<1x32x32xf32>
    %30 = vector.shape_cast %29 : vector<1x32x32xf32> to vector<32x32xf32>
    %c64 = arith.constant 64 : index
    %c64_18 = arith.constant 64 : index
    %31 = vector.load %arg7[%c64, %c64_18] : memref<128x128xf32, #tpu.memory_space<vmem>>, vector<32x32xf32>
    tpu.vector_store %arg7[%c64, %c64_18], %30 {strides = array<i32>} : memref<128x128xf32, #tpu.memory_space<vmem>>, vector<32x32xf32>,
    %32 = arith.index_cast %27 : i32 to index
    %c0_19 = arith.constant 0 : index
    %c0_20 = arith.constant 0 : index
    %33 = vector.load %arg5[%32, %c0_19, %c0_20] : memref<4x1x32xf32, #tpu.memory_space<vmem>>, vector<1x1x32xf32>
    %34 = vector.shape_cast %33 : vector<1x1x32xf32> to vector<1x32xf32>
    %c0_21 = arith.constant 0 : index
    %c64_22 = arith.constant 64 : index
    %35 = vector.load %arg8[%c0_21, %c64_22] : memref<1x128xf32, #tpu.memory_space<vmem>>, vector<1x32xf32>
    tpu.vector_store %arg8[%c0_21, %c64_22], %34 {strides = array<i32>} : memref<1x128xf32, #tpu.memory_space<vmem>>, vector<1x32xf32>,
    %c3_i32 = arith.constant 3 : i32
    %36 = arith.addi %0, %c3_i32 : i32
    %37 = arith.index_cast %36 : i32 to index
    %38 = memref.load %arg2[%37] : memref<8xi32, #tpu.memory_space<smem>>
    %39 = arith.index_cast %38 : i32 to index
    %c0_23 = arith.constant 0 : index
    %c0_24 = arith.constant 0 : index
    %40 = vector.load %arg4[%39, %c0_23, %c0_24] : memref<4x32x32xf32, #tpu.memory_space<vmem>>, vector<1x32x32xf32>
    %41 = vector.shape_cast %40 : vector<1x32x32xf32> to vector<32x32xf32>
    %c96 = arith.constant 96 : index
    %c96_25 = arith.constant 96 : index
    %42 = vector.load %arg7[%c96, %c96_25] : memref<128x128xf32, #tpu.memory_space<vmem>>, vector<32x32xf32>
    tpu.vector_store %arg7[%c96, %c96_25], %41 {strides = array<i32>} : memref<128x128xf32, #tpu.memory_space<vmem>>, vector<32x32xf32>,
    %43 = arith.index_cast %38 : i32 to index
    %c0_26 = arith.constant 0 : index
    %c0_27 = arith.constant 0 : index
    %44 = vector.load %arg5[%43, %c0_26, %c0_27] : memref<4x1x32xf32, #tpu.memory_space<vmem>>, vector<1x1x32xf32>
    %45 = vector.shape_cast %44 : vector<1x1x32xf32> to vector<1x32xf32>
    %c0_28 = arith.constant 0 : index
    %c96_29 = arith.constant 96 : index
    %46 = vector.load %arg8[%c0_28, %c96_29] : memref<1x128xf32, #tpu.memory_space<vmem>>, vector<1x32xf32>
    tpu.vector_store %arg8[%c0_28, %c96_29], %45 {strides = array<i32>} : memref<1x128xf32, #tpu.memory_space<vmem>>, vector<1x32xf32>,
    %c0_30 = arith.constant 0 : index
    %c0_31 = arith.constant 0 : index
    %47 = vector.load %arg3[%c0_30, %c0_31] : memref<8x128xf32, #tpu.memory_space<vmem>>, vector<8x128xf32>
    %c0_32 = arith.constant 0 : index
    %c0_33 = arith.constant 0 : index
    %48 = vector.load %arg7[%c0_32, %c0_33] : memref<128x128xf32, #tpu.memory_space<vmem>>, vector<128x128xf32>
    %cst_34 = arith.constant dense<0.000000e+00> : vector<8x128xf32>
    %49 = tpu.matmul %47, %48, %cst_34 {dimension_numbers = #tpu.dot_dimension_numbers<[1], [0], [0], [1], [0, 0, 1, 1], [], []>} : vector<8x128xf32>, vector<128x128xf32>, vector<8x128xf32> -> vector<8x128xf32>
    %c0_35 = arith.constant 0 : index
    %c0_36 = arith.constant 0 : index
    %50 = vector.load %arg8[%c0_35, %c0_36] : memref<1x128xf32, #tpu.memory_space<vmem>>, vector<1x128xf32>
    %51 = vector.broadcast %50 : vector<1x128xf32> to vector<8x128xf32>
    %52 = arith.addf %49, %51 : vector<8x128xf32>
    %53 = math.tanh %52 : vector<8x128xf32>
    %54 = arith.addf %53, %47 : vector<8x128xf32>
    %c0_37 = arith.constant 0 : index
    %c0_38 = arith.constant 0 : index
    %55 = vector.load %arg6[%c0_37, %c0_38] : memref<8x128xf32, #tpu.memory_space<vmem>>, vector<8x128xf32>
    tpu.vector_store %arg6[%c0_37, %c0_38], %54 {strides = array<i32>} : memref<8x128xf32, #tpu.memory_space<vmem>>, vector<8x128xf32>,
    return
  }
  func.func @transform_0(%arg0: i32, %arg1: i32, %arg2: memref<8xi32, #tpu.memory_space<smem>>) -> (i32, i32) {
    %c0_i32 = arith.constant 0 : i32
    return %arg1, %arg0 : i32, i32
  }
  func.func @transform_1(%arg0: i32, %arg1: i32, %arg2: memref<8xi32, #tpu.memory_space<smem>>) -> (i32, i32, i32) {
    %c0_i32 = arith.constant 0 : i32
    %c0_i32_0 = arith.constant 0 : i32
    %c0_i32_1 = arith.constant 0 : i32
    %c0_i32_2 = arith.constant 0 : i32
    return %c0_i32, %c0_i32_0, %c0_i32_1 : i32, i32, i32
  }
  func.func @transform_2(%arg0: i32, %arg1: i32, %arg2: memref<8xi32, #tpu.memory_space<smem>>) -> (i32, i32, i32) {
    %c0_i32 = arith.constant 0 : i32
    %c0_i32_0 = arith.constant 0 : i32
    %c0_i32_1 = arith.constant 0 : i32
    %c0_i32_2 = arith.constant 0 : i32
    return %c0_i32, %c0_i32_0, %c0_i32_1 : i32, i32, i32
  }
  func.func @transform_3(%arg0: i32, %arg1: i32, %arg2: memref<8xi32, #tpu.memory_space<smem>>) -> (i32, i32) {
    %c0_i32 = arith.constant 0 : i32
    return %arg1, %arg0 : i32, i32
  }
}

</mosaic_0001>

<bundles_post_ra>
// kernel: tpu_custom_call.1
= control target key start
LH: loop header
LB: loop body
LE: loop exit
PB: predicated region body
PF: predicated region fallthrough
CT: control target
= control target key end

     0   :  { %s882_s18 = smov [#allocation5]   ;;  %s1128_s0 = inlined_call_operand.hbm [shape: s32[8], index: 0, kind: input, shape index: {}]   ;;  %s1129_s1 = inlined_call_operand.hbm [shape: f32[8,256], index: 1, kind: input, shape index: {}]   ;;  %s1130_s2 = inlined_call_operand.hbm [shape: f32[4,32,32], index: 2, kind: input, shape index: {}]   ;;  %s1131_s3 = inlined_call_operand.hbm [shape: f32[4,1,32], index: 3, kind: input, shape index: {}]   ;;  %s1132_s4 = inlined_call_operand.hbm [shape: f32[8,256], index: 4, kind: output, shape index: {}]  }
   0x1   :  { %s10_s17 = sshll.u32 %s1128_s0, 4  ;;  %s11_s17 = int_to_ptr.hbm [resolvable:$true] %s10_s17 }
   0x2   :  { %13 = dma.hbm_to_smem %s11_s17, 16, %s882_s18, [#allocation4] }
   0x3   :  { %844 = dma.done.wait [#allocation4], 16 }
   0x4   :  { %845 = vsyncadd [#allocation4], 4294967280 }
   0x5   :  { %16 = sfence }
   0x6   :  { %17 = vsyncpa [#allocation7], 0 }
   0x7   :  { %19 = vsyncpa [#allocation7 + $0x1], 0 }
   0x8   :  { %20 = vsyncpa [#allocation10], 0 }
   0x9   :  { %21 = vsyncpa [#allocation8], 0 }
   0xa   :  { %23 = vsyncpa [#allocation8 + $0x1], 0  ;;  %s921_s19 = smov 0   ;;  %s923_s20 = smov 0  }
   0xb   :  { %s925_s21 = smov 0   ;;  %s927_s22 = smov 0  }
   0xc   :  { %s929_s0 = smov 0   ;;  %s931_s23 = smov 0  }
   0xd LB: > { %s570_s24 = sadd.s32 4294967295, %s880_s23   ;;  %p572_p0 = scmp.ge.s32.totalorder %s880_s23, 1  ;;  %s880_s23 = sphi %s931_s23, %s29_s23   ;;  %s876_s0 = sphi %s929_s0, %s1142_s0   ;;  %s872_s22 = sphi %s927_s22, %s1141_s22   ;;  %s868_s21 = sphi %s925_s21, %s1140_s21   ;;  %s864_s20 = sphi %s923_s20, %s1139_s20   ;;  %s860_s19 = sphi %s921_s19, %s1138_s19  }
   0xe   : > { %p955_p1 = scmp.eq.s32.totalorder %s570_s24, 0  ;;  %p144_p2 = scmp.lt.s32.totalorder %s880_s23, 3 }
   0xf   : > { %s155_s28 = sshll.u32 %s1130_s2, 4  ;;  %s883_s30 = smov [#allocation9]   ;;  %s156_s28 = int_to_ptr.hbm [resolvable:$true] %s155_s28 }
  0x10   : > { %p963_p3 = pnand %p572_p0, %p144_p2  ;;  %s157_s5 = sshll.u32 %s883_s30, 4  ;;  %s158_s5 = int_to_ptr.vmem [resolvable:$true] %s157_s5 }
  0x11   : > { %p575_p6 = scmp.ge.s32.totalorder %s880_s23, 2  ;;  %s169_s8 = sshll.u32 %s1131_s3, 4  ;;  %s170_s8 = int_to_ptr.hbm [resolvable:$true] %s169_s8 }
  0x12   : > { %p604_p4 = pneg %p963_p3  ;;  %s884_s9 = smov 128  }
  0x13   : > { %s885_s10 = smov 8   ;;  %s886_s11 = smov [#allocation11]  }
  0x14   : > { %p605_p5 = pnand %p604_p4, %p955_p1  ;;  %s171_s12 = sshll.u32 %s886_s11, 4  ;;  %s172_s12 = int_to_ptr.vmem [resolvable:$true] %s171_s12 }
  0x15   : > { %s887_s13 = smov 16   ;;  %s888_s14 = smov 1  }
  0x16   : > { %607 = dma.hbm_to_vmem [thread:$0]  (!%p605_p5), %s156_s28, 2048, %s158_s5, [#allocation10], %s884_s9, %s884_s9, %s885_s10  }
  0x17   : > { %610 = dma.hbm_to_vmem [thread:$0]  (!%p605_p5), %s170_s8, 64, %s172_s12, [#allocation10], %s887_s13, %s887_s13, %s888_s14  }
  0x18   : > { %s41_s15 = sadd.s32 1, %s876_s0  ;;  %s571_s16 = sadd.s32 4294967294, %s880_s23  }
  0x19   : > { %p43_p7 = scmp.ge.s32.totalorder %s41_s15, 2  ;;  %s50_s17 = sadd.s32 1, %s868_s21 }
  0x1a   : > { %p57_p8 = scmp.ne.s32.totalorder %s868_s21, %s864_s20  ;;  %p58_p9 = scmp.eq.s32.totalorder %s880_s23, 0 }
  0x1b   : > { %s1144_s15 = smov (%p43_p7, %s41_s15), 0  ;;  %p63_p10 = scmp.ne.s32.totalorder %s864_s20, %s860_s19 }
  0x1c   : > { %s46_s18 = ssub.s32 %s876_s0, %s1144_s15  ;;  %p131_p11 = scmp.eq.s32.totalorder %s570_s24, 1 }
  0x1d   : > { %p48_p12 = scmp.eq.s32.totalorder %s46_s18, 0  ;;  %p991_p13 = por %p955_p1, %p63_p10 }
  0x1e   : > { %p995_p0 = por %p131_p11, %p57_p8  ;;  %p137_p2 = scmp.eq.s32.totalorder %s571_s16, 1 }
  0x1f   : > { %s1000_s28 = scalar_select %p48_p12, %s868_s21, %s50_s17  }
  0x20   : > { %p59_p4 = por %p58_p9, %p57_p8  ;;  %p1002_p5 = por %p137_p2, %p63_p10 }
  0x21   : > { %s185_s5 = sand.u32 1, %s868_s21   ;;  %s577_s24 = sshll.u32 %s876_s0, 3 }
  0x22   : > { %p621_p7 = scmp.lt.s32.totalorder %s880_s23, 2  ;;  %s576_s6 = sshll.u32 %s185_s5, 3 }
  0x23   : > { %s195_s9 = scalar_lea.hbm %s1129_s1, %s577_s24  ;;  %s189_s11 = scalar_lea.vmem [#allocation6], %s576_s6 }
  0x24   : > { %s197_s10 = sshll.u32 %s195_s9, 4  ;;  %s199_s12 = sshll.u32 %s189_s11, 4  ;;  %s198_s10 = int_to_ptr.hbm [resolvable:$true] %s197_s10  ;;  %s200_s12 = int_to_ptr.vmem [resolvable:$true] %s199_s12 }
  0x25   : > { %p612_p11 = pnand %p621_p7, %p59_p4  ;;  %s186_s13 = scalar_lea.sflag [#allocation7], %s185_s5 }
  0x26   : > { %208 = sbr.rel (%p963_p3) target bundleno = 357 (0x165), region = 32  ;;  %s1015_s14 = sand.u32 (!%p963_p3), 1, %s864_s20  }
  0x27   : > { %614 = dma.hbm_to_vmem [thread:$0]  (!%p612_p11), %s198_s10, 128, %s200_s12, %s186_s13  }
  0x28   : > { %s579_s16 = sshll.u32 (!%p963_p3), %s1015_s14, 3  ;;  %s211_s17 = scalar_lea.sflag (!%p963_p3), [#allocation7], %s1015_s14 }
  0x29   : > { %s1021_s18 = scalar_lea.vmem (!%p963_p3), [#allocation6], %s579_s16 }
  0x2b   : > { %847 = dma.done.wait (%p991_p13), %s211_s17, 128  }
  0x2c   : > { %849 = vsyncadd (%p991_p13), %s211_s17, 4294967168 }
  0x2d   : > { %851 = dma.done.wait (%p955_p1), [#allocation10], 2112  }
  0x2e   : > { %853 = vsyncadd (%p955_p1), [#allocation10], 4294965184  ;;  %s1032_s29 = sshll.u32 %s872_s22, 2  ;;  %v889_v0 = vmov 0.0   ;;  %s890_s9 = smov 96   ;;  %vm343_vm0 = vcmask 785920  }
  0x2f   : > { %s357_s5 = sadd.s32 3, %s1032_s29  ;;  %s319_s6 = sadd.s32 2, %s1032_s29  ;;  %264 = vst [vmem:[#allocation2 + $0x78] sm:$0xff] %v889_v0  ;;  %vm305_vm1 = vcmask 523520   ;;  %vm381_vm2 = vcmask 1048320   ;;  %vm272_vm3 = vcmask 261120  }
  0x30   : > { %s1035_s24 = sld [smem:[#allocation5 + %s357_s5]]  ;;  %249 = vst [vmem:[#allocation2] sm:$0xff] %v889_v0  ;;  %s281_s10 = sadd.s32 1, %s1032_s29  ;;  %v395_v48 = vld [vmem:[%s1021_s18] sm:$0xff]  ;;  %vm279_vm4 = vcmask 253952   ;;  %vm317_vm5 = vcmask 516352  }
  0x31   : > { %s1038_s7 = sld [smem:[#allocation5 + %s319_s6]]  ;;  %250 = vst [vmem:[#allocation2 + $0x8] sm:$0xff] %v889_v0  ;;  %s891_s12 = smov 64   ;;  %vm355_vm6 = vcmask 778752   ;;  %vm393_vm7 = vcmask 1041152  }
  0x32   : > { %251 = vst [vmem:[#allocation2 + $0x10] sm:$0xff] %v889_v0  ;;  %s1046_s13 = sld [smem:[#allocation5 + %s281_s10]]  ;;  %s892_s6 = smov 32  }
  0x33   : > { %252 = vst [vmem:[#allocation2 + $0x18] sm:$0xff] %v889_v0  ;;  %s1063_s10 = sld [smem:[#allocation5 + %s1032_s29]]  ;;  %s589_s18 = sshll.u32 %s872_s22, 3 }
  0x34   : > { %253 = vst [vmem:[#allocation2 + $0x20] sm:$0xff] %v889_v0 }
  0x35   : > { %254 = vst [vmem:[#allocation2 + $0x28] sm:$0xff] %v889_v0 }
  0x36   : > { %s587_s26 = sshll.u32 %s1035_s24, 5  ;;  %255 = vst [vmem:[#allocation2 + $0x30] sm:$0xff] %v889_v0 }
  0x37   : > { %s586_s25 = sshll.u32 %s1038_s7, 5  ;;  %s360_s8 = scalar_lea.vmem [#allocation9], %s587_s26  ;;  %256 = vst [vmem:[#allocation2 + $0x38] sm:$0xff] %v889_v0 }
  0x38   : > { %v364_v1 = vld [vmem:[%s360_s8 + $0x18] sm:$0xff]  ;;  %v362_v2 = vld [vmem:[%s360_s8 + $0x8] sm:$0xff]  ;;  %s322_s11 = scalar_lea.vmem [#allocation9], %s586_s25  ;;  %257 = vst [vmem:[#allocation2 + $0x40] sm:$0xff] %v889_v0  ;;  %v363_v4 = vld [vmem:[%s360_s8 + $0x10] sm:$0xff]  ;;  %s585_s17 = sshll.u32 %s1046_s13, 5 }
  0x39   : > { %375 = vrot.lane.b32.xlu0 %v364_v1, %s890_s9  ;;  %371 = vrot.lane.b32.xlu1 %v362_v2, %s890_s9  ;;  %v326_v3 = vld [vmem:[%s322_s11 + $0x18] sm:$0xff]  ;;  %v361_v5 = vld [vmem:[%s360_s8] sm:$0xff]  ;;  %258 = vst [vmem:[#allocation2 + $0x48] sm:$0xff] %v889_v0  ;;  %s284_s5 = scalar_lea.vmem [#allocation9], %s585_s17  ;;  %s310_s26 = scalar_lea.vmem [#allocation11], %s1046_s13 }
  0x3a   : > { %337 = vrot.lane.b32.xlu2 %v326_v3, %s891_s12  ;;  %259 = vst [vmem:[#allocation2 + $0x50] sm:$0xff] %v889_v0  ;;  %v325_v6 = vld [vmem:[%s322_s11 + $0x10] sm:$0xff]  ;;  %v324_v7 = vld [vmem:[%s322_s11 + $0x8] sm:$0xff]  ;;  %v323_v8 = vld [vmem:[%s322_s11] sm:$0xff]  ;;  %s348_s25 = scalar_lea.vmem [#allocation11], %s1038_s7  ;;  %s386_s8 = scalar_lea.vmem [#allocation11], %s1035_s24 }
  0x3b   : > { %260 = vst [vmem:[#allocation2 + $0x58] sm:$0xff] %v889_v0  ;;  %v288_v9 = vld [vmem:[%s284_s5 + $0x18] sm:$0xff]  ;;  %v287_v10 = vld [vmem:[%s284_s5 + $0x10] sm:$0xff]  ;;  %v286_v11 = vld [vmem:[%s284_s5 + $0x8] sm:$0xff]  ;;  %s584_s11 = sshll.u32 %s1063_s10, 5  ;;  %s277_s29 = scalar_lea.vmem [#allocation11], %s1063_s10 }
  0x3c   : > { %261 = vst [vmem:[#allocation2 + $0x60] sm:$0xff] %v889_v0  ;;  %v285_v12 = vld [vmem:[%s284_s5] sm:$0xff]  ;;  %s267_s17 = scalar_lea.vmem [#allocation9], %s584_s11  ;;  %s812_s10 = scalar_lea.hbm %s1132_s4, 16 }
  0x3d   : > { %262 = vst [vmem:[#allocation2 + $0x68] sm:$0xff] %v889_v0  ;;  %v271_v16 = vld [vmem:[%s267_s17 + $0x18] sm:$0xff]  ;;  %v268_v17 = vld [vmem:[%s267_s17] sm:$0xff]  ;;  %v269_v20 = vld [vmem:[%s267_s17 + $0x8] sm:$0xff] }
  0x3e   : > { %263 = vst [vmem:[#allocation2 + $0x70] sm:$0xff] %v889_v0  ;;  %v270_v21 = vld [vmem:[%s267_s17 + $0x10] sm:$0xff]  ;;  %v684_v26 = vld [vmem:[%s310_s26] ss:$0 sm:$0xff] }
  0x3f   : > { %276 = vst.msk [vmem:[#allocation2 + $0x18] sm:$0xff] %vm272_vm3, %v271_v16  ;;  %v685_v27 = vld [vmem:[%s348_s25] ss:$0 sm:$0xff] }
  0x40   : > { %273 = vst.msk [vmem:[#allocation2] sm:$0xff] %vm272_vm3, %v268_v17  ;;  %v686_v28 = vld [vmem:[%s386_s8] ss:$0 sm:$0xff] }
  0x41   : > { %373 = vrot.lane.b32.xlu0 %v363_v4, %s890_s9  ;;  %369 = vrot.lane.b32.xlu1 %v361_v5, %s890_s9  ;;  %274 = vst.msk [vmem:[#allocation2 + $0x8] sm:$0xff] %vm272_vm3, %v269_v20  ;;  %v278_v49 = vld [vmem:[%s277_s29] sm:$0x1] }
  0x42   : > { %335 = vrot.lane.b32.xlu2 %v325_v6, %s891_s12  ;;  %275 = vst.msk [vmem:[#allocation2 + $0x10] sm:$0xff] %vm272_vm3, %v270_v21 }
  0x43   : > { %280 = vst.msk [vmem:[#allocation3] sm:$0x1] %vm279_vm4, %v278_v49 }
  0x46   : > { %v399_v44 = vld [vmem:[#allocation2 + $0x18] sm:$0xff] }
  0x47   : > { %v396_v47 = vld [vmem:[#allocation2] sm:$0xff] }
  0x48   : > { %v397_v46 = vld [vmem:[#allocation2 + $0x8] sm:$0xff] }
  0x49   : > { %333 = vrot.lane.b32.xlu0 %v324_v7, %s891_s12  ;;  %331 = vrot.lane.b32.xlu1 %v323_v8, %s891_s12  ;;  %v398_v45 = vld [vmem:[#allocation2 + $0x10] sm:$0xff] }
  0x4a   : > { %299 = vrot.lane.b32.xlu2 %v288_v9, %s892_s6 }
  0x51   : > { %297 = vrot.lane.b32.xlu0 %v287_v10, %s892_s6  ;;  %295 = vrot.lane.b32.xlu1 %v286_v11, %s892_s6 }
  0x52   : > { %293 = vrot.lane.b32.xlu2 %v285_v12, %s892_s6 }
  0x59   : > { %314 = vrot.lane.b32.xlu0 %v684_v26, %s892_s6  ;;  %352 = vrot.lane.b32.xlu1 %v685_v27, %s891_s12  ;;  %s247_s12 = scalar_lea.vmem [#allocation12], %s579_s16  ;;  %s440_s6 = scalar_lea.sflag [#allocation8], %s1015_s14 }
  0x5a   : > { %390 = vrot.lane.b32.xlu2 %v686_v28, %s890_s9  ;;  %s452_s9 = scalar_lea.hbm %s1132_s4, %s589_s18  ;;  %s454_s13 = sshll.u32 %s247_s12, 4  ;;  %s455_s13 = int_to_ptr.vmem [resolvable:$true] %s454_s13 }
  0x5b   : > { %s456_s5 = sshll.u32 %s452_s9, 4  ;;  %s457_s5 = int_to_ptr.hbm [resolvable:$true] %s456_s5 }
  0x5c   : > { %s806_s26 = sshra.s32 %s457_s5, 4  ;;  %s807_s26 = int_to_ptr.hbm [resolvable:$true] %s806_s26 }
  0x5d   : > { %s808_s25 = scalar_lea.hbm %s807_s26, 8  ;;  %p813_p9 = scmp.lt.s32.totalorder %s807_s26, %s1132_s4 }
  0x5e   : > { %p809_p1 = scmp.ne.s32.totalorder %s807_s26, %s808_s25  ;;  %p814_p10 = scmp.lt.s32.totalorder %s812_s10, %s808_s25 }
  0x60   : > { %p810_p3 = pnand %p809_p1, %p995_p0  ;;  %p815_p12 = por %p814_p10, %p813_p9 }
  0x62   : > { %p811_p8 = pneg %p810_p3 }
  0x64   : > { %p816_p13 = pnand %p815_p12, %p811_p8 }
  0x94   : > { %v338_v13 = vpop.permute.xlu2 %337 }
  0x95   : > { %347 = vst.msk [vmem:[#allocation2 + $0x58] sm:$0xff] %vm343_vm0, %v338_v13 }
  0x9c   : > { %v336_v14 = vpop.permute.xlu2 %335  ;;  %v407_v34 = vld [vmem:[#allocation2 + $0x58] sm:$0xff] }
  0x9d   : > { %346 = vst.msk [vmem:[#allocation2 + $0x50] sm:$0xff] %vm343_vm0, %v336_v14 }
  0xa4   : > { %v300_v15 = vpop.permute.xlu2 %299  ;;  %v406_v36 = vld [vmem:[#allocation2 + $0x50] sm:$0xff] }
  0xa5   : > { %309 = vst.msk [vmem:[#allocation2 + $0x38] sm:$0xff] %vm305_vm1, %v300_v15 }
  0xab   : > { %v376_v18 = vpop.permute.xlu0 %375  ;;  %v372_v19 = vpop.permute.xlu1 %371 }
  0xac   : > { %385 = vst.msk [vmem:[#allocation2 + $0x78] sm:$0xff] %vm381_vm2, %v376_v18  ;;  %v294_v22 = vpop.permute.xlu2 %293  ;;  %v403_v40 = vld [vmem:[#allocation2 + $0x38] sm:$0xff] }
  0xad   : > { %383 = vst.msk [vmem:[#allocation2 + $0x68] sm:$0xff] %vm381_vm2, %v372_v19 }
  0xae   : > { %306 = vst.msk [vmem:[#allocation2 + $0x20] sm:$0xff] %vm305_vm1, %v294_v22 }
  0xb3   : > { %v374_v23 = vpop.permute.xlu0 %373  ;;  %v411_v24 = vld [vmem:[#allocation2 + $0x78] sm:$0xff]  ;;  %v370_v25 = vpop.permute.xlu1 %369 }
  0xb4   : > { %384 = vst.msk [vmem:[#allocation2 + $0x70] sm:$0xff] %vm381_vm2, %v374_v23  ;;  %416 = vmatpush.msra.mxu0 %v411_v24  ;;  %v409_v32 = vld [vmem:[#allocation2 + $0x68] sm:$0xff]  ;;  %v391_v51 = vpop.permute.xlu2 %390 }
  0xb5   : > { %382 = vst.msk [vmem:[#allocation2 + $0x60] sm:$0xff] %vm381_vm2, %v370_v25  ;;  %v400_v43 = vld [vmem:[#allocation2 + $0x20] sm:$0xff] }
  0xbb   : > { %v334_v29 = vpop.permute.xlu0 %333  ;;  %v410_v30 = vld [vmem:[#allocation2 + $0x70] sm:$0xff]  ;;  %v332_v31 = vpop.permute.xlu1 %331 }
  0xbc   : > { %345 = vst.msk [vmem:[#allocation2 + $0x48] sm:$0xff] %vm343_vm0, %v334_v29  ;;  %417 = vmatpush.msra.mxu0 %v410_v30  ;;  %v408_v33 = vld [vmem:[#allocation2 + $0x60] sm:$0xff] }
  0xbd   : > { %344 = vst.msk [vmem:[#allocation2 + $0x40] sm:$0xff] %vm343_vm0, %v332_v31 }
  0xbe   : > { %418 = vmatpush.msra.mxu0 %v409_v32 }
  0xc0   : > { %419 = vmatpush.msra.mxu0 %v408_v33 }
  0xc2   : > { %420 = vmatpush.msra.mxu0 %v407_v34 }
  0xc3   : > { %v298_v35 = vpop.permute.xlu0 %297  ;;  %v296_v37 = vpop.permute.xlu1 %295  ;;  %v405_v38 = vld [vmem:[#allocation2 + $0x48] sm:$0xff] }
  0xc4   : > { %308 = vst.msk [vmem:[#allocation2 + $0x30] sm:$0xff] %vm305_vm1, %v298_v35  ;;  %421 = vmatpush.msra.mxu0 %v406_v36  ;;  %v404_v39 = vld [vmem:[#allocation2 + $0x40] sm:$0xff] }
  0xc5   : > { %307 = vst.msk [vmem:[#allocation2 + $0x28] sm:$0xff] %vm305_vm1, %v296_v37 }
  0xc6   : > { %422 = vmatpush.msra.mxu0 %v405_v38 }
  0xc8   : > { %423 = vmatpush.msra.mxu0 %v404_v39 }
  0xca   : > { %424 = vmatpush.msra.mxu0 %v403_v40 }
  0xcb   : > { %v402_v41 = vld [vmem:[#allocation2 + $0x30] sm:$0xff]  ;;  %v315_v50 = vpop.permute.xlu0 %314  ;;  %v353_v52 = vpop.permute.xlu1 %352 }
  0xcc   : > { %425 = vmatpush.msra.mxu0 %v402_v41  ;;  %v401_v42 = vld [vmem:[#allocation2 + $0x28] sm:$0xff]  ;;  %318 = vst.msk [vmem:[#allocation3] sm:$0x1] %vm317_vm5, %v315_v50 }
  0xcd   : > { %356 = vst.msk [vmem:[#allocation3] sm:$0x1] %vm355_vm6, %v353_v52 }
  0xce   : > { %426 = vmatpush.msra.mxu0 %v401_v42  ;;  %394 = vst.msk [vmem:[#allocation3] sm:$0x1] %vm393_vm7, %v391_v51 }
  0xd0   : > { %427 = vmatpush.msra.mxu0 %v400_v43 }
  0xd2   : > { %428 = vmatpush.msra.mxu0 %v399_v44 }
  0xd4   : > { %429 = vmatpush.msra.mxu0 %v398_v45 }
  0xd5   : > { %v687_v53 = vld [vmem:[#allocation3] ss:$0 sm:$0xff] }
  0xd6   : > { %430 = vmatpush.msra.mxu0 %v397_v46 }
  0xd8   : > { %431 = vmatpush.msra.mxu0 %v396_v47 }
  0xd9   : > { %432 = vmatmul.f32.vlgmr.msra.gmra.mxu0 %v395_v48 }
 0x156   : > { %v433_v54 = vpop.f32.mrf.mxu0 }
 0x157   : > { %v434_v55 = vadd.f32 %v687_v53, %v433_v54 }
 0x159   : > { %688 = vtanh.f32 %v434_v55 }
 0x15f   : > { %v689_v56 = vpop.eup %688 }
 0x160   : > { %v437_v57 = vadd.f32 %v689_v56, %v395_v48 }
 0x162   : > { %438 = vst [vmem:[%s247_s12] sm:$0xff] %v437_v57 }
 0x163   : > { %819 = shalt.err (!%p816_p13)
}
 0x164   : > { %602 = dma.vmem_to_hbm [thread:$0]  (%p995_p0), %s455_s13, 128, %s457_s5, %s440_s6  }
 0x165 PF: > { %s468_s14 = sand.u32 1, %s860_s19   ;;  %p616_p2 = pnand %p575_p6, %p1002_p5 }
 0x166   : > { %s469_s17 = scalar_lea.sflag [#allocation8], %s468_s14 }
 0x167   : > { %p617_p4 = pneg %p616_p2 }
 0x169   : > { %855 = dma.done.wait (%p617_p4), %s469_s17, 128  }
 0x16a   : > { %857 = vsyncadd (%p617_p4), %s469_s17, 4294967168  ;;  %s29_s23 = sadd.s32 1, %s880_s23   ;;  %s1138_s19 = smov %s864_s20 }
 0x16b   : > { %p26_p7 = scmp.ge.s32.totalorder %s29_s23, 4   ;;  %s1139_s20 = smov %s868_s21 }
 0x16c   : > { %s1140_s21 = smov %s1000_s28  ;;  %s1141_s22 = smov %s876_s0 }
 0x16d   : > { %s1142_s0 = smov %s1144_s15  ;;  %28 = sbr.rel (!%p26_p7) target bundleno = 13 (0xd), region = 93 }
 0x172   :  { %475 = vsyncpa [#allocation7], 1 }
 0x173   :  { %477 = vsyncpa [#allocation7 + $0x1], 1 }
 0x174   :  { %478 = vsyncpa [#allocation10], 1 }
 0x175   :  { %479 = vsyncpa [#allocation8], 1 }
 0x176   :  { %481 = vsyncpa [#allocation8 + $0x1], 1 }

</bundles_post_ra>
